<compile_context>
chip_gen: v7x
topology: tpu7x:2x2x1
jax: 0.10.0
libtpu: 0.0.40
codegen_flags: <defaults>
</compile_context>

<pallas_src>
import functools

import jax
import jax.numpy as jnp
from jax import lax
from jax.experimental import pallas as pl
from jax.experimental.pallas import tpu as pltpu

EPS = 1e-06
LANES = 128                 # vreg lane width
ACC_ROWS = 256              # accumulator / strip height (128 KiB f32 accumulator)
MAX_BLOCK_ROWS = 8192       # (8192,128) f32 tile = 4 MiB per input per step
MIN_PALLAS_ROWS = 512       # below this (64K elems) the fused XLA path wins
VMEM_LIMIT_BYTES = 48 * 1024 * 1024   # safe on v5e/v6e (128 MiB) and v7x (64 MiB)


def _device_kind() -> str:
    try:
        return jax.devices()[0].device_kind.lower()
    except Exception:
        return ""


def _make_input_spec(block_shape, index_map, buffer_count):
    """BlockSpec, optionally with a deeper pipeline (v7x); safe fallback."""
    if buffer_count is not None and hasattr(pl, "Buffered"):
        try:
            return pl.BlockSpec(block_shape, index_map,
                                pipeline_mode=pl.Buffered(buffer_count))
        except TypeError:
            pass
    return pl.BlockSpec(block_shape, index_map)


def _charbonnier_ref(x, y, eps):
    """Single-pass fused XLA reference / fallback (also used for ragged sizes)."""
    d = x.astype(jnp.float32) - y.astype(jnp.float32)
    return jnp.mean(jnp.sqrt(d * d + jnp.float32(eps)))


def _charbonnier_kernel(x_ref, y_ref, out_ref, *, eps, valid_rows, block_rows,
                        acc_rows, strips, steps_per_chunk, num_full_blocks,
                        needs_mask):
    c = pl.program_id(0)          # chunk ("parallel") axis
    s = pl.program_id(1)          # sequential step within the chunk
    eps_f = jnp.float32(eps)

    @pl.when(s == 0)
    def _init():
        out_ref[...] = jnp.zeros_like(out_ref)

    def _err(xs, ys):
        d = xs.astype(jnp.float32) - ys.astype(jnp.float32)
        return jnp.sqrt(d * d + eps_f)

    def _strip_err(k):
        off = pl.multiple_of(k * acc_rows, acc_rows)
        return _err(x_ref[pl.ds(off, acc_rows), :],
                    y_ref[pl.ds(off, acc_rows), :])

    def _accumulate_plain():
        if strips == 1:
            out_ref[...] += _err(x_ref[...], y_ref[...])
        else:
            def body(k, carry):
                out_ref[...] += _strip_err(k)
                return carry
            lax.fori_loop(0, strips, body, 0, unroll=True)

    if not needs_mask:
        _accumulate_plain()
    else:
        # Intended (unclamped) global block index; the index_map clamps the
        # actual DMA in-bounds, so out-of-range rows just hold garbage that is
        # selected away below (jnp.where is a true select -> NaN-safe).
        gb = c * steps_per_chunk + s

        @pl.when(gb < num_full_blocks)          # fully-valid block: no mask cost
        def _full_block():
            _accumulate_plain()

        @pl.when(gb >= num_full_blocks)         # partial / duplicated tail block
        def _tail_block():
            row = lax.broadcasted_iota(jnp.int32, (acc_rows, LANES), 0)
            base = gb * block_rows

            def _masked_strip(k):
                e = _strip_err(k)
                valid = (base + k * acc_rows + row) < valid_rows
                return jnp.where(valid, e, jnp.float32(0.0))

            if strips == 1:
                out_ref[...] += _masked_strip(0)
            else:
                def body(k, carry):
                    out_ref[...] += _masked_strip(k)
                    return carry
                lax.fori_loop(0, strips, body, 0, unroll=True)


def l1_charbonnier_loss(x, y, eps=EPS, *, min_pallas_rows=MIN_PALLAS_ROWS,
                        max_block_rows=None, num_chunks=None):
    """JAX/Pallas equivalent of L1_Charbonnier_loss.forward(X, Y)."""
    assert x.shape == y.shape, "X and Y must have the same shape"
    n_total = x.size
    if n_total == 0:
        return jnp.asarray(jnp.nan, dtype=x.dtype)

    rows, rem = divmod(n_total, LANES)
    # Fallback: tiny tensors, or element counts not divisible by the 128-lane
    # width (avoids the hidden full-array pad copy of the old version).
    if rem != 0 or rows < max(1, min_pallas_rows):
        return _charbonnier_ref(x, y, eps).astype(x.dtype)

    kind = _device_kind()
    if max_block_rows is None:
        max_block_rows = MAX_BLOCK_ROWS
    if num_chunks is None:
        # 2 TensorCores share the grid only on v7x / v4 / v5p; v5e & v6e are 1-TC.
        num_chunks = 2 if any(t in kind for t in ("v7", "v4", "v5p")) else 1
    buffer_count = 3 if "v7" in kind else None

    # ravel + reshape of a contiguous array is a free bitcast (no HBM copy).
    x2 = jnp.ravel(x).reshape(rows, LANES)
    y2 = jnp.ravel(y).reshape(rows, LANES)

    # Tiling: block rows are a multiple of the accumulator height so the body
    # strip-mines exactly; small arrays use one whole-array block.
    if rows >= ACC_ROWS:
        acc_rows = ACC_ROWS
        block_rows = max(acc_rows,
                         (min(max_block_rows, rows) // acc_rows) * acc_rows)
    else:
        acc_rows = rows
        block_rows = rows
    strips = block_rows // acc_rows

    num_blocks = pl.cdiv(rows, block_rows)
    num_full_blocks = rows // block_rows
    num_chunks = max(1, min(int(num_chunks), num_blocks))
    steps_per_chunk = pl.cdiv(num_blocks, num_chunks)
    padded_blocks = num_chunks * steps_per_chunk
    needs_mask = padded_blocks != num_full_blocks
    last_block = num_blocks - 1

    if padded_blocks > num_blocks:
        def in_index_map(c, s):
            # Clamp duplicated tail steps in-bounds; their contribution is
            # fully masked to zero inside the kernel.
            return (jnp.minimum(c * steps_per_chunk + s, last_block), 0)
    else:
        def in_index_map(c, s):
            return (c * steps_per_chunk + s, 0)

    if buffer_count is not None and steps_per_chunk < buffer_count:
        buffer_count = None
    in_spec = _make_input_spec((block_rows, LANES), in_index_map, buffer_count)

    kernel = functools.partial(
        _charbonnier_kernel, eps=eps, valid_rows=rows, block_rows=block_rows,
        acc_rows=acc_rows, strips=strips, steps_per_chunk=steps_per_chunk,
        num_full_blocks=num_full_blocks, needs_mask=needs_mask)

    itemsize = jnp.dtype(x.dtype).itemsize
    cost = pl.CostEstimate(
        flops=5 * n_total,
        transcendentals=n_total,
        bytes_accessed=2 * n_total * itemsize + num_chunks * acc_rows * LANES * 4)

    partials = pl.pallas_call(
        kernel,
        out_shape=jax.ShapeDtypeStruct((num_chunks * acc_rows, LANES), jnp.float32),
        grid_spec=pltpu.PrefetchScalarGridSpec(
            num_scalar_prefetch=0,
            grid=(num_chunks, steps_per_chunk),
            in_specs=[in_spec, in_spec],
            # Output block index depends only on the chunk -> it stays resident
            # in VMEM across the "arbitrary" step axis and acts as accumulator.
            out_specs=pl.BlockSpec((acc_rows, LANES), lambda c, s: (c, 0)),
        ),
        compiler_params=pltpu.CompilerParams(
            dimension_semantics=("parallel", "arbitrary"),
            vmem_limit_bytes=VMEM_LIMIT_BYTES),
        cost_estimate=cost,
    )(x2, y2)

    total = jnp.sum(partials, dtype=jnp.float32)
    loss = total / jnp.float32(n_total)
    return loss.astype(x.dtype)


if __name__ == "__main__":
    def ref_loss(a, b):
        d = a.astype(jnp.float32) - b.astype(jnp.float32)
        return jnp.mean(jnp.sqrt(d * d + jnp.float32(EPS)))

    # 1) Small NCHW inputs, as the PyTorch module would receive.
    kx, ky = jax.random.split(jax.random.PRNGKey(0))
    X = jax.random.normal(kx, (2, 4, 16, 16), dtype=jnp.float32)
    Y = jax.random.normal(ky, (2, 4, 16, 16), dtype=jnp.float32)

    out_default = l1_charbonnier_loss(X, Y)                     # tiny -> fused fallback
    jax.block_until_ready(out_default)
    assert jnp.allclose(out_default, ref_loss(X, Y), rtol=1e-5, atol=1e-6), \
        (out_default, ref_loss(X, Y))

    out_pallas = l1_charbonnier_loss(X, Y, min_pallas_rows=1)   # force Pallas path
    jax.block_until_ready(out_pallas)
    assert jnp.allclose(out_pallas, ref_loss(X, Y), rtol=1e-5, atol=1e-6), \
        (out_pallas, ref_loss(X, Y))

    # 2) Larger input exercising the multi-step grid, the masked partial tail
    #    block and the 2-chunk split (block size forced small to keep it tiny).
    kx2, ky2 = jax.random.split(jax.random.PRNGKey(1))
    X2 = jax.random.normal(kx2, (2, 4, 80, 128), dtype=jnp.float32)   # 640 rows
    Y2 = jax.random.normal(ky2, (2, 4, 80, 128), dtype=jnp.float32)
    out_big = l1_charbonnier_loss(X2, Y2, min_pallas_rows=1,
                                  max_block_rows=256, num_chunks=2)
    jax.block_until_ready(out_big)
    assert jnp.allclose(out_big, ref_loss(X2, Y2), rtol=1e-5, atol=1e-6), \
        (out_big, ref_loss(X2, Y2))

    # 3) Ragged element count (not a multiple of 128) -> fused-XLA fallback.
    kx3, ky3 = jax.random.split(jax.random.PRNGKey(2))
    X3 = jax.random.normal(kx3, (2, 3, 17, 17), dtype=jnp.float32)
    Y3 = jax.random.normal(ky3, (2, 3, 17, 17), dtype=jnp.float32)
    out_rag = l1_charbonnier_loss(X3, Y3)
    jax.block_until_ready(out_rag)
    assert jnp.allclose(out_rag, ref_loss(X3, Y3), rtol=1e-5, atol=1e-6), \
        (out_rag, ref_loss(X3, Y3))

    print("KERNEL_OK")
</pallas_src>

<mosaic_0001>
module attributes {stable_mosaic.version = 11 : i64} {
  func.func @_charbonnier_kernel(%arg0: i32, %arg1: i32, %arg2: memref<16x128xf32, #tpu.memory_space<vmem>>, %arg3: memref<16x128xf32, #tpu.memory_space<vmem>>, %arg4: memref<16x128xf32, #tpu.memory_space<vmem>>) attributes {dimension_semantics = [#tpu.dimension_semantics<parallel>, #tpu.dimension_semantics<arbitrary>], iteration_bounds = array<i64: 1, 1>, scalar_prefetch = 0 : i64, scratch_operands = 0 : i64, tpu.core_type = #tpu.core_type<tc>, window_params = [{transform_indices = @transform_0, window_bounds = array<i64: 16, 128>}, {transform_indices = @transform_1, window_bounds = array<i64: 16, 128>}, {transform_indices = @transform_2, window_bounds = array<i64: 16, 128>}]} {
    %c0_i32 = arith.constant 0 : i32
    %0 = arith.cmpi eq, %arg1, %c0_i32 : i32
    %1 = arith.extui %0 : i1 to i32
    %c0_i32_0 = arith.constant 0 : i32
    %2 = arith.cmpi ne, %1, %c0_i32_0 : i32
    scf.if %2 {
      %cst_8 = arith.constant 0.000000e+00 : f32
      %13 = vector.broadcast %cst_8 : f32 to vector<16x128xf32>
      %c0_9 = arith.constant 0 : index
      %c0_10 = arith.constant 0 : index
      %14 = vector.load %arg4[%c0_9, %c0_10] : memref<16x128xf32, #tpu.memory_space<vmem>>, vector<16x128xf32>
      tpu.vector_store %arg4[%c0_9, %c0_10], %13 {strides = array<i32>} : memref<16x128xf32, #tpu.memory_space<vmem>>, vector<16x128xf32>,
    } else {
    }
    %c0 = arith.constant 0 : index
    %c0_1 = arith.constant 0 : index
    %3 = vector.load %arg4[%c0, %c0_1] : memref<16x128xf32, #tpu.memory_space<vmem>>, vector<16x128xf32>
    %c0_2 = arith.constant 0 : index
    %c0_3 = arith.constant 0 : index
    %4 = vector.load %arg2[%c0_2, %c0_3] : memref<16x128xf32, #tpu.memory_space<vmem>>, vector<16x128xf32>
    %c0_4 = arith.constant 0 : index
    %c0_5 = arith.constant 0 : index
    %5 = vector.load %arg3[%c0_4, %c0_5] : memref<16x128xf32, #tpu.memory_space<vmem>>, vector<16x128xf32>
    %6 = arith.subf %4, %5 : vector<16x128xf32>
    %7 = arith.mulf %6, %6 : vector<16x128xf32>
    %cst = arith.constant 9.99999997E-7 : f32
    %8 = vector.broadcast %cst : f32 to vector<16x128xf32>
    %9 = arith.addf %7, %8 : vector<16x128xf32>
    %10 = math.sqrt %9 : vector<16x128xf32>
    %11 = arith.addf %3, %10 : vector<16x128xf32>
    %c0_6 = arith.constant 0 : index
    %c0_7 = arith.constant 0 : index
    %12 = vector.load %arg4[%c0_6, %c0_7] : memref<16x128xf32, #tpu.memory_space<vmem>>, vector<16x128xf32>
    tpu.vector_store %arg4[%c0_6, %c0_7], %11 {strides = array<i32>} : memref<16x128xf32, #tpu.memory_space<vmem>>, vector<16x128xf32>,
    return
  }
  func.func @transform_0(%arg0: i32, %arg1: i32) -> (i32, i32) {
    %c1_i32 = arith.constant 1 : i32
    %0 = arith.muli %arg0, %c1_i32 : i32
    %1 = arith.addi %0, %arg1 : i32
    %c0_i32 = arith.constant 0 : i32
    %c0_i32_0 = arith.constant 0 : i32
    return %1, %c0_i32 : i32, i32
  }
  func.func @transform_1(%arg0: i32, %arg1: i32) -> (i32, i32) {
    %c1_i32 = arith.constant 1 : i32
    %0 = arith.muli %arg0, %c1_i32 : i32
    %1 = arith.addi %0, %arg1 : i32
    %c0_i32 = arith.constant 0 : i32
    %c0_i32_0 = arith.constant 0 : i32
    return %1, %c0_i32 : i32, i32
  }
  func.func @transform_2(%arg0: i32, %arg1: i32) -> (i32, i32) {
    %c0_i32 = arith.constant 0 : i32
    %c0_i32_0 = arith.constant 0 : i32
    return %arg0, %c0_i32 : i32, i32
  }
}

</mosaic_0001>

<bundles_post_ra>
// kernel: tpu_custom_call.1
= control target key start
LH: loop header
LB: loop body
LE: loop exit
PB: predicated region body
PF: predicated region fallthrough
CT: control target
= control target key end

     0   :  { %7 = vsyncpa [#allocation3], 0  ;;  %s253_s0 = inlined_call_operand.hbm [shape: f32[16,128], index: 0, kind: input, shape index: {}]   ;;  %s254_s1 = inlined_call_operand.hbm [shape: f32[16,128], index: 1, kind: input, shape index: {}]   ;;  %s255_s2 = inlined_call_operand.hbm [shape: f32[16,128], index: 2, kind: output, shape index: {}]  }
   0x1   :  { %8 = vsyncpa [#allocation6], 0 }
   0x2   :  { %9 = vsyncpa [#allocation4], 0  ;;  %s188_s9 = smov [#allocation2]   ;;  %s116_s13 = scalar_lea.hbm %s253_s0, 256 }
   0x3   :  { %s19_s10 = sshll.u32 %s188_s9, 4  ;;  %p117_p0 = scmp.ne.s32.totalorder %s253_s0, %s116_s13  ;;  %s20_s10 = int_to_ptr.vmem [resolvable:$true] %s19_s10 }
   0x4   :  { %p120_p1 = scmp.lt.u32.totalorder %s116_s13, %s253_s0 }
   0x6   :  { %p122_p2 = pnand %p120_p1, %p117_p0 }
   0x8   :  { %125 = shalt.err (!%p122_p2)
}
   0x9   :  { %s126_s18 = scalar_lea.vmem %s20_s10, 256  ;;  %p131_p4 = scmp.lt.s32.totalorder %s20_s10, %s20_s10 }
   0xa   :  { %p127_p3 = scmp.ne.s32.totalorder %s20_s10, %s126_s18  ;;  %p132_p5 = scmp.lt.s32.totalorder %s126_s18, %s126_s18 }
   0xc   :  { %p133_p6 = por %p132_p5, %p131_p4 }
   0xe   :  { %p134_p7 = pnand %p133_p6, %p127_p3 }
  0x10   :  { %137 = shalt.err (!%p134_p7)
}
  0x11   :  { %s189_s19 = smov 128   ;;  %s190_s20 = smov 8  }
  0x12   :  { %25 = dma.hbm_to_vmem [thread:$0]  %s253_s0, 256, %s20_s10, [#allocation3], %s189_s19, %s189_s19, %s190_s20  }
  0x13   :  { %s191_s23 = smov [#allocation5]   ;;  %s138_s27 = scalar_lea.hbm %s254_s1, 256 }
  0x14   :  { %s35_s24 = sshll.u32 %s191_s23, 4  ;;  %p139_p8 = scmp.ne.s32.totalorder %s254_s1, %s138_s27  ;;  %s36_s24 = int_to_ptr.vmem [resolvable:$true] %s35_s24 }
  0x15   :  { %p142_p9 = scmp.lt.u32.totalorder %s138_s27, %s254_s1 }
  0x17   :  { %p144_p10 = pnand %p142_p9, %p139_p8 }
  0x19   :  { %147 = shalt.err (!%p144_p10)
}
  0x1a   :  { %s148_s4 = scalar_lea.vmem %s36_s24, 256  ;;  %p153_p12 = scmp.lt.s32.totalorder %s36_s24, %s36_s24 }
  0x1b   :  { %p149_p11 = scmp.ne.s32.totalorder %s36_s24, %s148_s4  ;;  %p154_p13 = scmp.lt.s32.totalorder %s148_s4, %s148_s4 }
  0x1d   :  { %p155_p0 = por %p154_p13, %p153_p12 }
  0x1f   :  { %p156_p1 = pnand %p155_p0, %p149_p11 }
  0x21   :  { %159 = shalt.err (!%p156_p1)
}
  0x22   :  { %41 = dma.hbm_to_vmem [thread:$0]  %s254_s1, 256, %s36_s24, [#allocation6], %s189_s19, %s189_s19, %s190_s20  }
  0x23   :  { %182 = dma.done.wait [#allocation3], 256  }
  0x24   :  { %183 = vsyncadd [#allocation3], 4294967040 }
  0x25   :  { %184 = dma.done.wait [#allocation6], 256  }
  0x26   :  { %185 = vsyncadd [#allocation6], 4294967040  ;;  %v60_v0 = vld [vmem:[#allocation2] sm:$0xff]  ;;  %v62_v1 = vld [vmem:[#allocation5] sm:$0xff]  ;;  %s192_s1 = smov [#allocation7]  }
  0x27   :  { %v61_v2 = vld [vmem:[#allocation2 + $0x8] sm:$0xff]  ;;  %v64_v3 = vsub.f32 %v60_v0, %v62_v1  ;;  %v63_v4 = vld [vmem:[#allocation5 + $0x8] sm:$0xff]  ;;  %s93_s6 = sshll.u32 %s192_s1, 4  ;;  %s94_s6 = int_to_ptr.vmem [resolvable:$true] %s93_s6 }
  0x28   :  { %v65_v5 = vsub.f32 %v61_v2, %v63_v4  ;;  %s160_s7 = scalar_lea.vmem %s94_s6, 256  ;;  %p165_p3 = scmp.lt.s32.totalorder %s94_s6, %s94_s6 }
  0x29   :  { %v66_v6 = vmul.f32 %v64_v3, %v64_v3  ;;  %p161_p2 = scmp.ne.s32.totalorder %s94_s6, %s160_s7  ;;  %p166_p4 = scmp.lt.s32.totalorder %s160_s7, %s160_s7 }
  0x2a   :  { %v67_v7 = vmul.f32 %v65_v5, %v65_v5 }
  0x2b   :  { %v68_v8 = vadd.f32 1e-06, %v66_v6  ;;  %p167_p5 = por %p166_p4, %p165_p3 }
  0x2c   :  { %v69_v9 = vadd.f32 1e-06, %v67_v7 }
  0x2d   :  { %112 = vrsqrt.f32 %v68_v8  ;;  %vm72_vm0 = vcmp.eq.f32.partialorder %v68_v8, inf  ;;  %v75_v11 = vand.u32 2147483648, %v68_v8  ;;  %vm74_vm1 = vcmp.eq.f32.partialorder %v68_v8, 0.0  ;;  %p168_p6 = pnand %p167_p5, %p161_p2 }
  0x2e   :  { %114 = vrsqrt.f32 %v69_v9  ;;  %vm79_vm2 = vcmp.eq.f32.partialorder %v69_v9, inf  ;;  %v82_v14 = vand.u32 2147483648, %v69_v9  ;;  %vm81_vm3 = vcmp.eq.f32.partialorder %v69_v9, 0.0 }
  0x37   :  { %v113_v10 = vpop.eup %112 }
  0x38   :  { %v115_v12 = vpop.eup %114  ;;  %v71_v13 = vmul.f32 %v113_v10, %v68_v8 }
  0x39   :  { %v78_v15 = vmul.f32 %v115_v12, %v69_v9 }
  0x3a   :  { %v73_v16 = vsel %vm72_vm0, %v68_v8, %v71_v13 }
  0x3b   :  { %v76_v17 = vsel %vm74_vm1, %v75_v11, %v73_v16  ;;  %v80_v18 = vsel %vm79_vm2, %v69_v9, %v78_v15 }
  0x3c   :  { %v83_v19 = vsel %vm81_vm3, %v82_v14, %v80_v18  ;;  %86 = vst [vmem:[#allocation7] sm:$0xff] %v76_v17 }
  0x3d   :  { %87 = vst [vmem:[#allocation7 + $0x8] sm:$0xff] %v83_v19 }
  0x3e   :  { %171 = shalt.err (!%p168_p6)
}
  0x3f   :  { %s172_s10 = scalar_lea.hbm %s255_s2, 256 }
  0x40   :  { %p173_p7 = scmp.ne.s32.totalorder %s255_s2, %s172_s10  ;;  %p176_p8 = scmp.lt.u32.totalorder %s172_s10, %s255_s2 }
  0x42   :  { %p178_p9 = pnand %p176_p8, %p173_p7 }
  0x44   :  { %181 = shalt.err (!%p178_p9)
}
  0x45   :  { %99 = dma.vmem_to_hbm [thread:$0]  %s94_s6, 256, %s255_s2, [#allocation4], %s189_s19, %s189_s19, %s190_s20  }
  0x46   :  { %186 = dma.done.wait [#allocation4], 256  }
  0x47   :  { %187 = vsyncadd [#allocation4], 4294967040 }
  0x48   :  { %103 = vsyncpa [#allocation3], 1 }
  0x49   :  { %104 = vsyncpa [#allocation6], 1 }
  0x4a   :  { %105 = vsyncpa [#allocation4], 1 }

</bundles_post_ra>
